<compile_context>
chip_gen: v7x
topology: tpu7x:2x2x1
jax: 0.10.0
libtpu: 0.0.40
codegen_flags: <defaults>
</compile_context>

<pallas_src>
import functools

import jax
import jax.numpy as jnp
from jax import lax
from jax.experimental import pallas as pl
from jax.experimental.pallas import tpu as pltpu


def _round_up(n, m):
    return ((n + m - 1) // m) * m


# ----------------------------------------------------------------------------- shared kernel pieces
def _make_mm(matmul_dtype):
    def mm(a, w):
        # Optionally feed the MXU bf16 operands (v5e/v6e/v7x all take bf16); accumulate f32.
        return jnp.dot(a.astype(matmul_dtype), w.astype(matmul_dtype),
                       preferred_element_type=jnp.float32)
    return mm


def _unpack(w1_ref, ws32_ref, ws16_ref, bias_ref, input_dim, latent_dim, hidden_dim):
    """Static slices of the packed parameter slabs (VMEM views, no extra DMA)."""
    L8 = _round_up(latent_dim, 8)
    H8 = _round_up(hidden_dim, 8)
    return dict(
        w1=w1_ref[...],                                        # (in, 256)
        w2=ws32_ref[0:256, :],                                 # (256, H)
        wd1=ws32_ref[256:256 + latent_dim, :],                 # (L, H)
        wd2=ws32_ref[256 + L8:256 + L8 + hidden_dim, :],       # (H, H)
        wmulv=ws16_ref[0:hidden_dim, 0:2 * latent_dim],        # (H, 2L) fused mu|logvar
        wd3=ws16_ref[H8:H8 + hidden_dim, 0:input_dim],         # (H, in)
        b1=bias_ref[0:1, 0:256],
        b2=bias_ref[1:2, 0:hidden_dim],
        gamma=bias_ref[2:3, 0:hidden_dim],
        beta=bias_ref[3:4, 0:hidden_dim],
        bmulv=bias_ref[4:5, 0:2 * latent_dim],
        bd1=bias_ref[5:6, 0:hidden_dim],
        bd2=bias_ref[6:7, 0:hidden_dim],
        bd3=bias_ref[7:8, 0:input_dim],
    )


def _encode_pre_bn(x, V, mm):
    h = mm(x, V["w1"]) + V["b1"]
    h = jnp.where(h > 0, h, 0.2 * h)                            # LeakyReLU(0.2)
    return mm(h, V["w2"]) + V["b2"]


def _heads_and_decode(h, eps, V, mm, latent_dim, input_dim, out_cols):
    """Fused mu|logvar head, reparameterize, decoder; returns the output slab tile."""
    ml = mm(h, V["wmulv"]) + V["bmulv"]                         # (B, 2L) = [mu | logvar]
    mu = ml[:, 0:latent_dim]
    logvar = ml[:, latent_dim:2 * latent_dim]
    z = mu + eps * jnp.exp(0.5 * logvar)
    d = jnp.maximum(mm(z, V["wd1"]) + V["bd1"], 0.0)
    d = jnp.maximum(mm(d, V["wd2"]) + V["bd2"], 0.0)
    recon = mm(d, V["wd3"]) + V["bd3"]
    # Single lane-dense store: [recon | ml | z | zero pad]; ml already holds mu|logvar
    # contiguously in lanes (no slice-then-reconcat).
    pieces = [recon, ml, z]
    used = input_dim + 3 * latent_dim
    pad = out_cols - used
    if pad > 0:
        pieces.append(jnp.zeros((h.shape[0], pad), jnp.float32))
    return jnp.concatenate(pieces, axis=1)


# ----------------------------------------------------------------------------- gridless kernel
def vae_kernel_single(x_ref, eps_ref, w1_ref, ws32_ref, ws16_ref, bias_ref, out_ref,
                      *, matmul_dtype=jnp.float32):
    batch, input_dim = x_ref.shape
    latent_dim = eps_ref.shape[1]
    hidden_dim = ws32_ref.shape[1]
    mm = _make_mm(matmul_dtype)
    V = _unpack(w1_ref, ws32_ref, ws16_ref, bias_ref, input_dim, latent_dim, hidden_dim)

    h = _encode_pre_bn(x_ref[...], V, mm)

    # BatchNorm1d, training mode: batch mean, biased variance, eps=1e-5 (f32), folded
    # into one fused scale/shift.
    mean = jnp.mean(h, axis=0, keepdims=True)
    cen = h - mean
    var = jnp.mean(cen * cen, axis=0, keepdims=True)
    scale = V["gamma"] * lax.rsqrt(var + 1e-5)
    h = cen * scale + V["beta"]
    # TODO(synk): BatchNorm running_mean/running_var (momentum=0.1) buffer updates are not
    # emitted; only the normalized forward output is reproduced.

    out_ref[...] = _heads_and_decode(h, eps_ref[...], V, mm, latent_dim, input_dim,
                                     out_ref.shape[1])


# ----------------------------------------------------------------------------- tiled two-pass kernel
def vae_kernel_tiled(x_ref, eps_ref, w1_ref, ws32_ref, ws16_ref, bias_ref, out_ref,
                     stats_ref, *, total_batch, padded_batch, matmul_dtype=jnp.float32):
    # grid = (2, n_batch_tiles): pass 0 accumulates BN sum / sumsq over the FULL batch,
    # pass 1 recomputes the cheap pre-BN encoder, normalizes with the shared stats and
    # finishes the network.  stats_ref rows: 0=sum, 1=sumsq, 2=scale, 3=shift.
    p = pl.program_id(0)
    t = pl.program_id(1)
    TB, input_dim = x_ref.shape
    latent_dim = eps_ref.shape[1]
    hidden_dim = ws32_ref.shape[1]
    mm = _make_mm(matmul_dtype)
    V = _unpack(w1_ref, ws32_ref, ws16_ref, bias_ref, input_dim, latent_dim, hidden_dim)

    @pl.when(p == 0)
    def _():
        @pl.when(t == 0)
        def _():
            stats_ref[...] = jnp.zeros_like(stats_ref)

        h = _encode_pre_bn(x_ref[...], V, mm)
        if padded_batch != total_batch:
            # Zero-padded rows must not contribute to the batch statistics.
            row = t * TB + lax.broadcasted_iota(jnp.int32, (TB, 1), 0)
            valid = (row < total_batch).astype(jnp.float32)
            hv = h * valid
        else:
            hv = h
        stats_ref[0:1, :] += jnp.sum(hv, axis=0, keepdims=True)
        stats_ref[1:2, :] += jnp.sum(hv * h, axis=0, keepdims=True)
        # Deterministic (unused) content for this block's writeback; pass 1 overwrites it.
        out_ref[...] = jnp.zeros_like(out_ref)

    @pl.when(p == 1)
    def _():
        @pl.when(t == 0)
        def _():
            inv_b = 1.0 / float(total_batch)
            mean = stats_ref[0:1, :] * inv_b
            # One-pass biased variance, kept in f32 (cancellation is benign at these scales).
            var = stats_ref[1:2, :] * inv_b - mean * mean
            scale = V["gamma"] * lax.rsqrt(var + 1e-5)
            stats_ref[2:3, :] = scale
            stats_ref[3:4, :] = V["beta"] - mean * scale

        h = _encode_pre_bn(x_ref[...], V, mm)
        h = h * stats_ref[2:3, :] + stats_ref[3:4, :]
        # TODO(synk): BatchNorm running_mean/running_var (momentum=0.1) buffer updates are
        # not emitted; only the normalized forward output is reproduced.
        out_ref[...] = _heads_and_decode(h, eps_ref[...], V, mm, latent_dim, input_dim,
                                         out_ref.shape[1])


# ----------------------------------------------------------------------------- params
def init_linear(key, in_dim, out_dim):
    """Xavier-uniform weight stored pre-transposed as (in, out); zero bias (out,)."""
    bound = (6.0 / (in_dim + out_dim)) ** 0.5
    w = jax.random.uniform(key, (in_dim, out_dim), jnp.float32, -bound, bound)
    b = jnp.zeros((out_dim,), jnp.float32)
    return w, b


def init_vae_params(key, input_dim, latent_dim, hidden_dim=64):
    ks = jax.random.split(key, 7)
    w1, b1 = init_linear(ks[0], input_dim, 256)
    w2, b2 = init_linear(ks[1], 256, hidden_dim)
    gamma = jnp.ones((hidden_dim,), jnp.float32)
    beta = jnp.zeros((hidden_dim,), jnp.float32)
    wmu, bmu = init_linear(ks[2], hidden_dim, latent_dim)
    wlv, blv = init_linear(ks[3], hidden_dim, latent_dim)
    wd1, bd1 = init_linear(ks[4], latent_dim, hidden_dim)
    wd2, bd2 = init_linear(ks[5], hidden_dim, hidden_dim)
    wd3, bd3 = init_linear(ks[6], hidden_dim, input_dim)
    return (w1, b1, w2, b2, gamma, beta, wmu, bmu, wlv, blv,
            wd1, bd1, wd2, bd2, wd3, bd3)


def _pad_rows(w, mult=8):
    pad = _round_up(w.shape[0], mult) - w.shape[0]
    if pad:
        w = jnp.concatenate([w, jnp.zeros((pad, w.shape[1]), w.dtype)], axis=0)
    return w


def _pad_cols(w, width):
    pad = width - w.shape[1]
    if pad:
        w = jnp.concatenate([w, jnp.zeros((w.shape[0], pad), w.dtype)], axis=1)
    return w


def _bias_row(b, width):
    return jnp.concatenate([b, jnp.zeros((width - b.shape[0],), b.dtype)])[None, :]


def pack_vae_params(params, weight_dtype=jnp.float32):
    """Pack 16 arrays into 4 slabs: (w1, ws32, ws16, bias).

    weight_dtype=jnp.bfloat16 stores the three weight slabs in bf16 (halves weight DMA
    bytes); biases/gamma/beta always stay f32.
    """
    (w1, b1, w2, b2, gamma, beta, wmu, bmu, wlv, blv,
     wd1, bd1, wd2, bd2, wd3, bd3) = params
    input_dim = w1.shape[0]
    hidden_dim = w2.shape[1]
    latent_dim = wmu.shape[1]

    # Fused mu|logvar head.
    wmulv = jnp.concatenate([wmu, wlv], axis=1)          # (H, 2L)
    bmulv = jnp.concatenate([bmu, blv], axis=0)          # (2L,)

    # Hidden-wide weights, each segment row-padded to a sublane multiple.
    ws32 = jnp.concatenate([_pad_rows(w2), _pad_rows(wd1), _pad_rows(wd2)], axis=0)

    # Narrow-output weights (fused head + last decoder layer).
    w16_cols = max(2 * latent_dim, input_dim)
    ws16 = jnp.concatenate([_pad_rows(_pad_cols(wmulv, w16_cols)),
                            _pad_rows(_pad_cols(wd3, w16_cols))], axis=0)

    # All 1-D params as one (8, W) slab, one row each (lane offset 0 everywhere).
    bw = max(256, hidden_dim, 2 * latent_dim, input_dim)
    bias = jnp.concatenate(
        [_bias_row(b1, bw), _bias_row(b2, bw), _bias_row(gamma, bw),
         _bias_row(beta, bw), _bias_row(bmulv, bw), _bias_row(bd1, bw),
         _bias_row(bd2, bw), _bias_row(bd3, bw)], axis=0)

    return (w1.astype(weight_dtype), ws32.astype(weight_dtype),
            ws16.astype(weight_dtype), bias.astype(jnp.float32))


# ----------------------------------------------------------------------------- wrapper
def vae_forward(x, eps, packed_params, *, matmul_dtype=jnp.float32, block_batch=None):
    """block_batch=None (or B <= block_batch): gridless whole-batch-in-VMEM kernel.
    Otherwise: two-pass batch-tiled kernel (use for large B, mandatory on v7x's 64 MiB VMEM)."""
    B, input_dim = x.shape
    latent_dim = eps.shape[1]
    w1, ws32, ws16, bias = packed_params
    hidden_dim = ws32.shape[1]
    out_cols = _round_up(input_dim + 3 * latent_dim, 128)   # lane-dense output slab

    if block_batch is not None and B > block_batch:
        TB = block_batch
        if TB % 8 != 0:
            raise ValueError("block_batch must be a multiple of 8")
        B_pad = _round_up(B, TB)
        if B_pad != B:
            x = jnp.concatenate([x, jnp.zeros((B_pad - B, input_dim), x.dtype)], axis=0)
            eps = jnp.concatenate([eps, jnp.zeros((B_pad - B, latent_dim), eps.dtype)],
                                  axis=0)
        n_tiles = B_pad // TB
        kernel = functools.partial(vae_kernel_tiled, total_batch=B, padded_batch=B_pad,
                                   matmul_dtype=matmul_dtype)
        out = pl.pallas_call(
            kernel,
            out_shape=jax.ShapeDtypeStruct((B_pad, out_cols), jnp.float32),
            grid=(2, n_tiles),
            in_specs=[
                pl.BlockSpec((TB, input_dim), lambda p, t: (t, 0)),
                pl.BlockSpec((TB, latent_dim), lambda p, t: (t, 0)),
                # Weight slabs: constant index maps -> DMA'd once, VMEM-resident.
                pl.BlockSpec(w1.shape, lambda p, t: (0, 0)),
                pl.BlockSpec(ws32.shape, lambda p, t: (0, 0)),
                pl.BlockSpec(ws16.shape, lambda p, t: (0, 0)),
                pl.BlockSpec(bias.shape, lambda p, t: (0, 0)),
            ],
            out_specs=pl.BlockSpec((TB, out_cols), lambda p, t: (t, 0)),
            scratch_shapes=[pltpu.VMEM((4, hidden_dim), jnp.float32)],
            compiler_params=pltpu.CompilerParams(
                # Batch tiles share BatchNorm statistics through the scratch accumulator,
                # so neither grid axis may be marked "parallel".
                dimension_semantics=("arbitrary", "arbitrary"),
                vmem_limit_bytes=32 * 1024 * 1024),
        )(x, eps, w1, ws32, ws16, bias)
    else:
        # Tiny problem: one block, everything resident in VMEM; grid would be pure overhead.
        kernel = functools.partial(vae_kernel_single, matmul_dtype=matmul_dtype)
        args = (x, eps, w1, ws32, ws16, bias)
        out = pl.pallas_call(
            kernel,
            out_shape=jax.ShapeDtypeStruct((B, out_cols), jnp.float32),
            in_specs=[pl.BlockSpec(memory_space=pltpu.VMEM) for _ in args],
            out_specs=pl.BlockSpec(memory_space=pltpu.VMEM),
            compiler_params=pltpu.CompilerParams(
                vmem_limit_bytes=32 * 1024 * 1024),   # above v5e's 16 MiB scoped default
        )(*args)

    recon = out[:B, 0:input_dim]
    mu = out[:B, input_dim:input_dim + latent_dim]
    logvar = out[:B, input_dim + latent_dim:input_dim + 2 * latent_dim]
    z = out[:B, input_dim + 2 * latent_dim:input_dim + 3 * latent_dim]
    return recon, mu, logvar, z


# ----------------------------------------------------------------------------- reference
def vae_reference(x, eps, params, matmul_dtype=jnp.float32):
    (w1, b1, w2, b2, gamma, beta, wmu, bmu, wlv, blv,
     wd1, bd1, wd2, bd2, wd3, bd3) = params

    def mm(a, w):
        return jnp.dot(a.astype(matmul_dtype), w.astype(matmul_dtype),
                       preferred_element_type=jnp.float32)

    h = mm(x, w1) + b1
    h = jnp.where(h > 0, h, 0.2 * h)
    h = mm(h, w2) + b2
    mean = jnp.mean(h, axis=0, keepdims=True)
    var = jnp.mean((h - mean) ** 2, axis=0, keepdims=True)
    h = (h - mean) * jax.lax.rsqrt(var + 1e-5) * gamma + beta
    mu = mm(h, wmu) + bmu
    logvar = mm(h, wlv) + blv
    z = mu + eps * jnp.exp(0.5 * logvar)
    d = jnp.maximum(mm(z, wd1) + bd1, 0.0)
    d = jnp.maximum(mm(d, wd2) + bd2, 0.0)
    recon = mm(d, wd3) + bd3
    return recon, mu, logvar, z


def _check(got, ref, atol, rtol):
    for g, r in zip(got, ref):
        assert g.shape == r.shape, (g.shape, r.shape)
        assert jnp.allclose(g, r, atol=atol, rtol=rtol), float(jnp.max(jnp.abs(g - r)))


if __name__ == "__main__":
    key = jax.random.PRNGKey(0)
    k_param, k_x, k_eps, k_x2, k_eps2 = jax.random.split(key, 5)

    batch, input_dim, latent_dim, hidden_dim = 8, 16, 8, 32

    params = init_vae_params(k_param, input_dim, latent_dim, hidden_dim)
    packed = pack_vae_params(params)

    x = jax.random.normal(k_x, (batch, input_dim), jnp.float32)
    # eps ~ N(0,1) supplied explicitly (equivalent of torch.randn_like inside forward).
    eps = jax.random.normal(k_eps, (batch, latent_dim), jnp.float32)

    # ---- 1) small batch: gridless single-block path (f32) ----
    outs = vae_forward(x, eps, packed)
    jax.block_until_ready(outs)
    recon, mu, logvar, z = outs
    assert recon.shape == (batch, input_dim)
    assert mu.shape == (batch, latent_dim)
    assert logvar.shape == (batch, latent_dim)
    assert z.shape == (batch, latent_dim)
    _check(outs, vae_reference(x, eps, params), atol=5e-3, rtol=5e-3)

    # ---- 2) larger batch: tiled two-pass path (exercises batch grid + padded-row masking) ----
    B2, TB = 200, 128
    x2 = jax.random.normal(k_x2, (B2, input_dim), jnp.float32)
    eps2 = jax.random.normal(k_eps2, (B2, latent_dim), jnp.float32)
    outs2 = vae_forward(x2, eps2, packed, block_batch=TB)
    jax.block_until_ready(outs2)
    _check(outs2, vae_reference(x2, eps2, params), atol=5e-3, rtol=5e-3)

    # ---- 3) bf16-stored weights / bf16 MXU operands (compared against a bf16 reference) ----
    packed_bf16 = pack_vae_params(params, weight_dtype=jnp.bfloat16)
    outs3 = vae_forward(x, eps, packed_bf16, matmul_dtype=jnp.bfloat16)
    jax.block_until_ready(outs3)
    _check(outs3, vae_reference(x, eps, params, matmul_dtype=jnp.bfloat16),
           atol=1e-2, rtol=1e-2)

    print("KERNEL_OK")
</pallas_src>

<mosaic_0001>
module attributes {stable_mosaic.version = 11 : i64} {
  func.func @vae_kernel_single(%arg0: memref<8x16xf32, #tpu.memory_space<vmem>>, %arg1: memref<8x8xf32, #tpu.memory_space<vmem>>, %arg2: memref<16x256xf32, #tpu.memory_space<vmem>>, %arg3: memref<296x32xf32, #tpu.memory_space<vmem>>, %arg4: memref<64x16xf32, #tpu.memory_space<vmem>>, %arg5: memref<8x256xf32, #tpu.memory_space<vmem>>, %arg6: memref<8x128xf32, #tpu.memory_space<vmem>>) attributes {dimension_semantics = [], scalar_prefetch = 0 : i64, scratch_operands = 0 : i64, tpu.core_type = #tpu.core_type<tc>} {
    %c0 = arith.constant 0 : index
    %c0_0 = arith.constant 0 : index
    %0 = vector.load %arg2[%c0, %c0_0] : memref<16x256xf32, #tpu.memory_space<vmem>>, vector<16x256xf32>
    %c0_1 = arith.constant 0 : index
    %c0_2 = arith.constant 0 : index
    %1 = vector.load %arg3[%c0_1, %c0_2] : memref<296x32xf32, #tpu.memory_space<vmem>>, vector<256x32xf32>
    %c256 = arith.constant 256 : index
    %c0_3 = arith.constant 0 : index
    %2 = vector.load %arg3[%c256, %c0_3] : memref<296x32xf32, #tpu.memory_space<vmem>>, vector<8x32xf32>
    %c264 = arith.constant 264 : index
    %c0_4 = arith.constant 0 : index
    %3 = vector.load %arg3[%c264, %c0_4] : memref<296x32xf32, #tpu.memory_space<vmem>>, vector<32x32xf32>
    %c0_5 = arith.constant 0 : index
    %c0_6 = arith.constant 0 : index
    %4 = vector.load %arg4[%c0_5, %c0_6] : memref<64x16xf32, #tpu.memory_space<vmem>>, vector<32x16xf32>
    %c32 = arith.constant 32 : index
    %c0_7 = arith.constant 0 : index
    %5 = vector.load %arg4[%c32, %c0_7] : memref<64x16xf32, #tpu.memory_space<vmem>>, vector<32x16xf32>
    %c0_8 = arith.constant 0 : index
    %c0_9 = arith.constant 0 : index
    %6 = vector.load %arg5[%c0_8, %c0_9] : memref<8x256xf32, #tpu.memory_space<vmem>>, vector<1x256xf32>
    %c1 = arith.constant 1 : index
    %c0_10 = arith.constant 0 : index
    %7 = vector.load %arg5[%c1, %c0_10] : memref<8x256xf32, #tpu.memory_space<vmem>>, vector<1x32xf32>
    %c2 = arith.constant 2 : index
    %c0_11 = arith.constant 0 : index
    %8 = vector.load %arg5[%c2, %c0_11] : memref<8x256xf32, #tpu.memory_space<vmem>>, vector<1x32xf32>
    %c3 = arith.constant 3 : index
    %c0_12 = arith.constant 0 : index
    %9 = vector.load %arg5[%c3, %c0_12] : memref<8x256xf32, #tpu.memory_space<vmem>>, vector<1x32xf32>
    %c4 = arith.constant 4 : index
    %c0_13 = arith.constant 0 : index
    %10 = vector.load %arg5[%c4, %c0_13] : memref<8x256xf32, #tpu.memory_space<vmem>>, vector<1x16xf32>
    %c5 = arith.constant 5 : index
    %c0_14 = arith.constant 0 : index
    %11 = vector.load %arg5[%c5, %c0_14] : memref<8x256xf32, #tpu.memory_space<vmem>>, vector<1x32xf32>
    %c6 = arith.constant 6 : index
    %c0_15 = arith.constant 0 : index
    %12 = vector.load %arg5[%c6, %c0_15] : memref<8x256xf32, #tpu.memory_space<vmem>>, vector<1x32xf32>
    %c7 = arith.constant 7 : index
    %c0_16 = arith.constant 0 : index
    %13 = vector.load %arg5[%c7, %c0_16] : memref<8x256xf32, #tpu.memory_space<vmem>>, vector<1x16xf32>
    %c0_17 = arith.constant 0 : index
    %c0_18 = arith.constant 0 : index
    %14 = vector.load %arg0[%c0_17, %c0_18] : memref<8x16xf32, #tpu.memory_space<vmem>>, vector<8x16xf32>
    %cst = arith.constant dense<0.000000e+00> : vector<8x256xf32>
    %15 = tpu.matmul %14, %0, %cst {dimension_numbers = #tpu.dot_dimension_numbers<[1], [0], [0], [1], [0, 0, 1, 1], [], []>} : vector<8x16xf32>, vector<16x256xf32>, vector<8x256xf32> -> vector<8x256xf32>
    %16 = vector.broadcast %6 : vector<1x256xf32> to vector<8x256xf32>
    %17 = arith.addf %15, %16 : vector<8x256xf32>
    %cst_19 = arith.constant 0.000000e+00 : f32
    %18 = vector.broadcast %cst_19 : f32 to vector<8x256xf32>
    %19 = arith.cmpf ogt, %17, %18 : vector<8x256xf32>
    %cst_20 = arith.constant 2.000000e-01 : f32
    %20 = vector.broadcast %cst_20 : f32 to vector<8x256xf32>
    %21 = arith.mulf %20, %17 : vector<8x256xf32>
    %22 = arith.select %19, %17, %21 : vector<8x256xi1>, vector<8x256xf32>
    %cst_21 = arith.constant dense<0.000000e+00> : vector<8x32xf32>
    %23 = tpu.matmul %22, %1, %cst_21 {dimension_numbers = #tpu.dot_dimension_numbers<[1], [0], [0], [1], [0, 0, 1, 1], [], []>} : vector<8x256xf32>, vector<256x32xf32>, vector<8x32xf32> -> vector<8x32xf32>
    %24 = vector.broadcast %7 : vector<1x32xf32> to vector<8x32xf32>
    %25 = arith.addf %23, %24 : vector<8x32xf32>
    %cst_22 = arith.constant dense<0.000000e+00> : vector<32xf32>
    %26 = vector.multi_reduction <add>, %25, %cst_22 [0] : vector<8x32xf32> to vector<32xf32>
    %27 = vector.shape_cast %26 : vector<32xf32> to vector<1x32xf32>
    %cst_23 = arith.constant 8.000000e+00 : f32
    %28 = vector.broadcast %cst_23 : f32 to vector<1x32xf32>
    %29 = arith.divf %27, %28 : vector<1x32xf32>
    %30 = vector.broadcast %29 : vector<1x32xf32> to vector<8x32xf32>
    %31 = arith.subf %25, %30 : vector<8x32xf32>
    %32 = arith.mulf %31, %31 : vector<8x32xf32>
    %cst_24 = arith.constant dense<0.000000e+00> : vector<32xf32>
    %33 = vector.multi_reduction <add>, %32, %cst_24 [0] : vector<8x32xf32> to vector<32xf32>
    %34 = vector.shape_cast %33 : vector<32xf32> to vector<1x32xf32>
    %cst_25 = arith.constant 8.000000e+00 : f32
    %35 = vector.broadcast %cst_25 : f32 to vector<1x32xf32>
    %36 = arith.divf %34, %35 : vector<1x32xf32>
    %cst_26 = arith.constant 9.99999974E-6 : f32
    %37 = vector.broadcast %cst_26 : f32 to vector<1x32xf32>
    %38 = arith.addf %36, %37 : vector<1x32xf32>
    %39 = math.rsqrt %38 : vector<1x32xf32>
    %40 = arith.mulf %8, %39 : vector<1x32xf32>
    %41 = vector.broadcast %40 : vector<1x32xf32> to vector<8x32xf32>
    %42 = arith.mulf %31, %41 : vector<8x32xf32>
    %43 = vector.broadcast %9 : vector<1x32xf32> to vector<8x32xf32>
    %44 = arith.addf %42, %43 : vector<8x32xf32>
    %c0_27 = arith.constant 0 : index
    %c0_28 = arith.constant 0 : index
    %45 = vector.load %arg1[%c0_27, %c0_28] : memref<8x8xf32, #tpu.memory_space<vmem>>, vector<8x8xf32>
    %cst_29 = arith.constant dense<0.000000e+00> : vector<8x16xf32>
    %46 = tpu.matmul %44, %4, %cst_29 {dimension_numbers = #tpu.dot_dimension_numbers<[1], [0], [0], [1], [0, 0, 1, 1], [], []>} : vector<8x32xf32>, vector<32x16xf32>, vector<8x16xf32> -> vector<8x16xf32>
    %47 = vector.broadcast %10 : vector<1x16xf32> to vector<8x16xf32>
    %48 = arith.addf %46, %47 : vector<8x16xf32>
    %49 = vector.extract_strided_slice %48 {offsets = [0, 0], sizes = [8, 8], strides = [1, 1]} : vector<8x16xf32> to vector<8x8xf32>
    %50 = vector.extract_strided_slice %48 {offsets = [0, 8], sizes = [8, 8], strides = [1, 1]} : vector<8x16xf32> to vector<8x8xf32>
    %cst_30 = arith.constant 5.000000e-01 : f32
    %51 = vector.broadcast %cst_30 : f32 to vector<8x8xf32>
    %52 = arith.mulf %51, %50 : vector<8x8xf32>
    %53 = math.exp %52 : vector<8x8xf32>
    %54 = arith.mulf %45, %53 : vector<8x8xf32>
    %55 = arith.addf %49, %54 : vector<8x8xf32>
    %cst_31 = arith.constant dense<0.000000e+00> : vector<8x32xf32>
    %56 = tpu.matmul %55, %2, %cst_31 {dimension_numbers = #tpu.dot_dimension_numbers<[1], [0], [0], [1], [0, 0, 1, 1], [], []>} : vector<8x8xf32>, vector<8x32xf32>, vector<8x32xf32> -> vector<8x32xf32>
    %57 = vector.broadcast %11 : vector<1x32xf32> to vector<8x32xf32>
    %58 = arith.addf %56, %57 : vector<8x32xf32>
    %cst_32 = arith.constant 0.000000e+00 : f32
    %59 = vector.broadcast %cst_32 : f32 to vector<8x32xf32>
    %60 = arith.maximumf %58, %59 : vector<8x32xf32>
    %cst_33 = arith.constant dense<0.000000e+00> : vector<8x32xf32>
    %61 = tpu.matmul %60, %3, %cst_33 {dimension_numbers = #tpu.dot_dimension_numbers<[1], [0], [0], [1], [0, 0, 1, 1], [], []>} : vector<8x32xf32>, vector<32x32xf32>, vector<8x32xf32> -> vector<8x32xf32>
    %62 = vector.broadcast %12 : vector<1x32xf32> to vector<8x32xf32>
    %63 = arith.addf %61, %62 : vector<8x32xf32>
    %cst_34 = arith.constant 0.000000e+00 : f32
    %64 = vector.broadcast %cst_34 : f32 to vector<8x32xf32>
    %65 = arith.maximumf %63, %64 : vector<8x32xf32>
    %cst_35 = arith.constant dense<0.000000e+00> : vector<8x16xf32>
    %66 = tpu.matmul %65, %5, %cst_35 {dimension_numbers = #tpu.dot_dimension_numbers<[1], [0], [0], [1], [0, 0, 1, 1], [], []>} : vector<8x32xf32>, vector<32x16xf32>, vector<8x16xf32> -> vector<8x16xf32>
    %67 = vector.broadcast %13 : vector<1x16xf32> to vector<8x16xf32>
    %68 = arith.addf %66, %67 : vector<8x16xf32>
    %cst_36 = arith.constant 0.000000e+00 : f32
    %69 = vector.broadcast %cst_36 : f32 to vector<8x88xf32>
    %70 = tpu.concatenate %68, %48, %55, %69 in 1 : vector<8x16xf32>, vector<8x16xf32>, vector<8x8xf32>, vector<8x88xf32> -> vector<8x128xf32>
    %c0_37 = arith.constant 0 : index
    %c0_38 = arith.constant 0 : index
    %71 = vector.load %arg6[%c0_37, %c0_38] : memref<8x128xf32, #tpu.memory_space<vmem>>, vector<8x128xf32>
    tpu.vector_store %arg6[%c0_37, %c0_38], %70 {strides = array<i32>} : memref<8x128xf32, #tpu.memory_space<vmem>>, vector<8x128xf32>,
    return
  }
}

</mosaic_0001>

<bundles_post_ra>
// kernel: tpu_custom_call.1
= control target key start
LH: loop header
LB: loop body
LE: loop exit
PB: predicated region body
PF: predicated region fallthrough
CT: control target
= control target key end

     0   :  { %v784_v5 = vmov 0.0   ;;  %vm93_vm0 = vcmask 130048   ;;  %s1039_s0 = inlined_call_operand.vmem [shape: f32[8,16], index: 0, kind: input, shape index: {}]   ;;  %s1040_s1 = inlined_call_operand.vmem [shape: f32[8,8], index: 1, kind: input, shape index: {}]   ;;  %s1041_s2 = inlined_call_operand.vmem [shape: f32[16,256], index: 2, kind: input, shape index: {}]   ;;  %s1042_s3 = inlined_call_operand.vmem [shape: f32[296,32], index: 3, kind: input, shape index: {}]   ;;  %s1043_s4 = inlined_call_operand.vmem [shape: f32[64,16], index: 4, kind: input, shape index: {}]   ;;  %s1044_s5 = inlined_call_operand.vmem [shape: f32[8,256], index: 5, kind: input, shape index: {}]   ;;  %s1045_s6 = inlined_call_operand.hbm [shape: f32[8,128], index: 6, kind: output, shape index: {}]  }
   0x1   :  { %v25_v0 = vld [vmem:[%s1041_s2 + $0x8] sm:$0xff]  ;;  %v27_v1 = vld [vmem:[%s1041_s2 + $0x18] sm:$0xff]  ;;  %v24_v2 = vld [vmem:[%s1041_s2] sm:$0xff]  ;;  %161 = vmatprep.mubr.f32.mxu0 %v784_v5 }
   0x2   :  { %v695_v3 = vpack.c.bf16 %v27_v1, %v25_v0  ;;  %v26_v4 = vld [vmem:[%s1041_s2 + $0x10] sm:$0xff]  ;;  %v44_v6 = vld [vmem:[%s1042_s3 + $0x80] sm:$0xff]  ;;  %v45_v9 = vld [vmem:[%s1042_s3 + $0x88] sm:$0xff] }
   0x3   :  { %v697_v7 = vpack.c.bf16 %v26_v4, %v24_v2  ;;  %v81_v8 = vld [vmem:[%s1039_s0] sm:$0xff]  ;;  %v29_v11 = vld [vmem:[%s1042_s3 + $0x8] sm:$0xff]  ;;  %v699_v12 = vpack.c.bf16 %v45_v9, %v44_v6  ;;  %v46_v14 = vld [vmem:[%s1042_s3 + $0x90] sm:$0xff] }
   0x4   :  { %v28_v10 = vld [vmem:[%s1042_s3] sm:$0xff]  ;;  %696 = vmatprep.subr.bf16.mxu0 %v695_v3  ;;  %v47_v15 = vld [vmem:[%s1042_s3 + $0x98] sm:$0xff]  ;;  %v30_v16 = vld [vmem:[%s1042_s3 + $0x10] sm:$0xff] }
   0x5   :  { %v701_v13 = vpack.c.bf16 %v29_v11, %v28_v10  ;;  %698 = vmatpush1.bf16.msra.mxu0 %v697_v7  ;;  %v703_v17 = vpack.c.bf16 %v47_v15, %v46_v14  ;;  %v31_v18 = vld [vmem:[%s1042_s3 + $0x18] sm:$0xff]  ;;  %v48_v19 = vld [vmem:[%s1042_s3 + $0xa0] sm:$0xff]  ;;  %v49_v20 = vld [vmem:[%s1042_s3 + $0xa8] sm:$0xff]  ;;  %700 = vmatprep.subr.bf16.mxu1 %v699_v12 }
   0x6   :  { %v705_v21 = vpack.c.bf16 %v31_v18, %v30_v16  ;;  %v707_v22 = vpack.c.bf16 %v49_v20, %v48_v19  ;;  %v32_v23 = vld [vmem:[%s1042_s3 + $0x20] sm:$0xff]  ;;  %v33_v24 = vld [vmem:[%s1042_s3 + $0x28] sm:$0xff]  ;;  %v50_v25 = vld [vmem:[%s1042_s3 + $0xb0] sm:$0xff] }
   0x7   :  { %702 = vmatpush3.bf16.msra.mxu1 %v701_v13  ;;  %v51_v26 = vld [vmem:[%s1042_s3 + $0xb8] sm:$0xff]  ;;  %v709_v27 = vpack.c.bf16 %v33_v24, %v32_v23 }
   0x8   :  { %600 = vmatmul.mubr.msk.f32.vlgmr.msra.gmra.mrb[0].mxu0 %vm93_vm0, %v81_v8  ;;  %704 = vmatprep.subr.bf16.mxu1 %v703_v17 }
   0xb   :  { %706 = vmatpush3.bf16.msra.mxu1 %v705_v21 }
   0xc   :  { %11 = vsyncpa [#allocation3], 0  ;;  %708 = vmatprep.subr.bf16.mxu1 %v707_v22  ;;  %v711_v28 = vpack.c.bf16 %v51_v26, %v50_v25  ;;  %v34_v29 = vld [vmem:[%s1042_s3 + $0x30] sm:$0xff]  ;;  %v35_v30 = vld [vmem:[%s1042_s3 + $0x38] sm:$0xff]  ;;  %v83_v56 = vlaneseq  ;;  %v785_v11 = vmov 0.0|0.0   ;;  %vm786_vm3 = vmmov 0  }
   0xd   :  { %v52_v31 = vld [vmem:[%s1042_s3 + $0xc0] sm:$0xff]  ;;  %v53_v32 = vld [vmem:[%s1042_s3 + $0xc8] sm:$0xff]  ;;  %v713_v33 = vpack.c.bf16 %v35_v30, %v34_v29  ;;  %v54_v37 = vld [vmem:[%s1042_s3 + $0xd0] sm:$0xff]  ;;  %731 = vmatprep.subr.bf16.mxu0 %v785_v11  ;;  %665 = vmatprep.mubr.msk.f32.mxu0 %vm786_vm3, %v784_v5  ;;  %vm244_vm4 = vcmask 261120   ;;  %s787_s2 = smov 120   ;;  %s788_s13 = smov 16  }
   0xe   :  { %v715_v34 = vpack.c.bf16 %v53_v32, %v52_v31  ;;  %v36_v35 = vld [vmem:[%s1042_s3 + $0x40] sm:$0xff]  ;;  %v37_v36 = vld [vmem:[%s1042_s3 + $0x48] sm:$0xff]  ;;  %v55_v38 = vld [vmem:[%s1042_s3 + $0xd8] sm:$0xff]  ;;  %v84_v57 = vshrl.u32 %v83_v56, 7  ;;  %vm352_vm5 = vcmask 64512   ;;  %s789_s19 = smov 32  }
   0xf   :  { %710 = vmatpush3.bf16.msra.mxu1 %v709_v27  ;;  %v717_v39 = vpack.c.bf16 %v37_v36, %v36_v35  ;;  %v719_v40 = vpack.c.bf16 %v55_v38, %v54_v37  ;;  %v38_v41 = vld [vmem:[%s1042_s3 + $0x50] sm:$0xff]  ;;  %v39_v42 = vld [vmem:[%s1042_s3 + $0x58] sm:$0xff]  ;;  %v56_v44 = vld [vmem:[%s1042_s3 + $0xe0] sm:$0xff]  ;;  %vm583_vm6 = vcmask 326656  }
  0x10   :  { %712 = vmatprep.subr.bf16.mxu1 %v711_v28  ;;  %v721_v43 = vpack.c.bf16 %v39_v42, %v38_v41  ;;  %v57_v45 = vld [vmem:[%s1042_s3 + $0xe8] sm:$0xff]  ;;  %v40_v47 = vld [vmem:[%s1042_s3 + $0x60] sm:$0xff]  ;;  %v58_v50 = vld [vmem:[%s1042_s3 + $0xf0] sm:$0xff]  ;;  %v85_v58 = vsub.s32 0, %v84_v57  ;;  %v89_v60 = vsub.s32 1, %v84_v57 }
  0x11   :  { %v723_v46 = vpack.c.bf16 %v57_v45, %v56_v44  ;;  %v41_v48 = vld [vmem:[%s1042_s3 + $0x68] sm:$0xff]  ;;  %v59_v51 = vld [vmem:[%s1042_s3 + $0xf8] sm:$0xff]  ;;  %v42_v53 = vld [vmem:[%s1042_s3 + $0x70] sm:$0xff] }
  0x12   :  { %v725_v49 = vpack.c.bf16 %v41_v48, %v40_v47  ;;  %v727_v52 = vpack.c.bf16 %v59_v51, %v58_v50  ;;  %v43_v54 = vld [vmem:[%s1042_s3 + $0x78] sm:$0xff]  ;;  %v73_v59 = vld [vmem:[%s1044_s5] ss:$8 sm:$0x3]  ;;  %v67_v12 = vld [vmem:[%s1043_s4 + $0x10] sm:$0xff] }
  0x13   :  { %714 = vmatpush3.bf16.msra.mxu1 %v713_v33  ;;  %v729_v55 = vpack.c.bf16 %v43_v54, %v42_v53  ;;  %v86_v61 = vrot.slane %v73_v59, %v85_v58  ;;  %v90_v62 = vrot.slane %v73_v59, %v89_v60  ;;  %v65_v8 = vld [vmem:[%s1043_s4] sm:$0xff]  ;;  %v66_v9 = vld [vmem:[%s1043_s4 + $0x8] sm:$0xff]  ;;  %v68_v13 = vld [vmem:[%s1043_s4 + $0x18] sm:$0xff] }
  0x14   :  { %716 = vmatprep.subr.bf16.mxu1 %v715_v34  ;;  %v732_v10 = vpack.c.bf16 %v66_v9, %v65_v8  ;;  %v735_v14 = vpack.c.bf16 %v68_v13, %v67_v12  ;;  %v74_v16 = vld [vmem:[%s1044_s5 + $0x1] ss:$0 sm:$0xff]  ;;  %v76_v42 = vld [vmem:[%s1044_s5 + $0x3] ss:$0 sm:$0xff]  ;;  %v77_v45 = vld [vmem:[%s1044_s5 + $0x4] ss:$0 sm:$0xff] }
  0x15   :  { %v60_v51 = vld [vmem:[%s1042_s3 + $0x100] sm:$0xff]  ;;  %v61_v54 = vld [vmem:[%s1042_s3 + $0x108] sm:$0xff]  ;;  %v63_v60 = vld [vmem:[%s1042_s3 + $0x118] sm:$0xff] }
  0x16   :  { %733 = vmatpush3.bf16.msra.mxu0 %v732_v10  ;;  %v269_v53 = vld [vmem:[%s1040_s1] sm:$0xff]  ;;  %v71_v8 = vld [vmem:[%s1043_s4 + $0x30] sm:$0xff]  ;;  %v72_v9 = vld [vmem:[%s1043_s4 + $0x38] sm:$0xff] }
  0x17   :  { %718 = vmatpush3.bf16.msra.mxu1 %v717_v39  ;;  %734 = vmatprep.subr.bf16.mxu0 %v785_v11  ;;  %v75_v39 = vld [vmem:[%s1044_s5 + $0x2] ss:$0 sm:$0xff]  ;;  %v747_v10 = vpack.c.bf16 %v72_v9, %v71_v8  ;;  %v79_v12 = vld [vmem:[%s1044_s5 + $0x6] ss:$0 sm:$0xff] }
  0x18   :  { %720 = vmatprep.subr.bf16.mxu1 %v719_v40 }
  0x1a   :  { %736 = vmatpush3.bf16.msra.mxu0 %v735_v14 }
  0x1b   :  { %722 = vmatpush3.bf16.msra.mxu1 %v721_v43  ;;  %668 = vmatprep.subr.mxu0 %v784_v5 }
  0x1c   :  { %724 = vmatprep.subr.bf16.mxu1 %v723_v46 }
  0x1f   :  { %726 = vmatpush3.bf16.msra.mxu1 %v725_v49 }
  0x20   :  { %728 = vmatprep.subr.bf16.mxu1 %v727_v52 }
  0x23   :  { %730 = vmatpush3.bf16.msra.mxu1 %v729_v55  ;;  %v62_v55 = vld [vmem:[%s1042_s3 + $0x110] sm:$0xff] }
  0x24   :  { %v738_v58 = vpack.c.bf16 %v62_v55, %v61_v54 }
  0xdb   :  { %v163_v63 = vpop.f32.mrb[0].mxu0 }
  0xdc   :  { %v164_v0 = vadd.f32 %v163_v63, %v86_v61  ;;  %v165_v1 = vpop.f32.mrb[1].mxu0  ;;  %v64_v61 = vld [vmem:[%s1042_s3 + $0x120] sm:$0xff] }
  0xdd   :  { %v166_v2 = vadd.f32 %v165_v1, %v90_v62  ;;  %v741_v62 = vpack.c.bf16 %v64_v61, %v63_v60  ;;  %v78_v63 = vld [vmem:[%s1044_s5 + $0x5] ss:$0 sm:$0xff]  ;;  %v70_v1 = vld [vmem:[%s1043_s4 + $0x28] sm:$0xff] }
  0xde   :  { %v170_v3 = vmul.f32 0.2, %v164_v0  ;;  %vm168_vm2 = vcmp.gt.f32.partialorder %v164_v0, 0.0 }
  0xdf   :  { %vm169_vm1 = vcmp.gt.f32.partialorder %v166_v2, 0.0  ;;  %v171_v4 = vmul.f32 0.2, %v166_v2 }
  0xe0   :  { %v172_v7 = vsel %vm168_vm2, %v164_v0, %v170_v3  ;;  %v69_v0 = vld [vmem:[%s1043_s4 + $0x20] sm:$0xff]  ;;  %s790_s4 = smov [#allocation2]  }
  0xe1   :  { %v173_v6 = vsel %vm169_vm1, %v166_v2, %v171_v4  ;;  %s592_s12 = sshll.u32 %s790_s4, 4  ;;  %s593_s12 = int_to_ptr.vmem [resolvable:$true] %s592_s12 }
  0xe2   :  { %238 = vmatprep.mubr.f32.mxu1 %v173_v6  ;;  %v744_v6 = vpack.c.bf16 %v70_v1, %v69_v0  ;;  %p765_p1 = scmp.lt.s32.totalorder %s593_s12, %s593_s12 }
  0xe3   :  { %239 = vmatmul.mubr.f32.vlgmr.msra.gmra.mrb[0].mxu1 %v172_v7 }
 0x1b6   :  { %v637_v15 = vpop.f32.mrb[0].mxu1 }
 0x1b7   :  { %v638_v17 = vpop.f32.mrb[1].mxu1 }
 0x1b8   :  { %v639_v18 = vadd.f32 %v638_v17, %v637_v15 }
 0x1ba   :  { %v241_v19 = vadd.f32 %v639_v18, %v74_v16 }
 0x1bc   :  { %v245_v20 = vsel %vm244_vm4, %v241_v19, 0.0 }
 0x1bd   :  { %v246_v21 = vrot.slane %v245_v20, 4 }
 0x1bf   :  { %v247_v22 = vadd.f32 %v246_v21, %v245_v20 }
 0x1c1   :  { %v248_v23 = vrot.slane %v247_v22, 2 }
 0x1c3   :  { %v249_v24 = vadd.f32 %v248_v23, %v247_v22 }
 0x1c5   :  { %v250_v25 = vrot.slane %v249_v24, 1 }
 0x1c7   :  { %v251_v26 = vadd.f32 %v250_v25, %v249_v24 }
 0x1c9   :  { %v253_v27 = vmul.f32 0.125, %v251_v26 }
 0x1cb   :  { %v254_v28 = vsub.f32 %v241_v19, %v253_v27 }
 0x1cd   :  { %v255_v29 = vmul.f32 %v254_v28, %v254_v28 }
 0x1cf   :  { %v256_v30 = vsel %vm244_vm4, %v255_v29, 0.0 }
 0x1d0   :  { %v257_v31 = vrot.slane %v256_v30, 4 }
 0x1d2   :  { %v258_v32 = vadd.f32 %v257_v31, %v256_v30 }
 0x1d4   :  { %v259_v33 = vrot.slane %v258_v32, 2 }
 0x1d6   :  { %v260_v34 = vadd.f32 %v259_v33, %v258_v32 }
 0x1d8   :  { %v261_v35 = vrot.slane %v260_v34, 1 }
 0x1da   :  { %v262_v36 = vadd.f32 %v261_v35, %v260_v34 }
 0x1dc   :  { %v263_v37 = vmul.f32 0.125, %v262_v36 }
 0x1de   :  { %v264_v38 = vadd.f32 1e-05, %v263_v37 }
 0x1e0   :  { %756 = vrsqrt.f32 %v264_v38 }
 0x1ea   :  { %v757_v40 = vpop.eup %756 }
 0x1eb   :  { %v266_v41 = vmul.f32 %v757_v40, %v75_v39 }
 0x1ed   :  { %v267_v43 = vmul.f32 %v266_v41, %v254_v28 }
 0x1ef   :  { %v268_v44 = vadd.f32 %v267_v43, %v76_v42 }
 0x1f1   :  { %666 = vmatmul.mubr.msk.f32.vlgmr.msra.gmra.mrb[2].mxu0 %vm244_vm4, %v268_v44 }
 0x1f2   :  { %670 = vmatprep.mubr.msk.f32.mxu0 %vm786_vm3, %v784_v5  ;;  %669 = vmatpush3.msra.mxu0 %v60_v51 }
 0x1f3   :  { %737 = vmatprep.subr.bf16.mxu0 %v785_v11 }
 0x2c4   :  { %v339_v46 = vpop.f32.mrb[2].mxu0 }
 0x2c5   :  { %v340_v47 = vadd.f32 %v339_v46, %v77_v45  ;;  %v667_v48 = vpop.f32.mrb[3].mxu0 }
 0x2c7   :  { %v343_v49 = vmul.f32 0.5, %v340_v47 }
 0x2c9   :  { %v344_v50 = vmul.f32 1.442695, %v343_v49 }
 0x2cb   :  { %758 = vpow2.f32 %v344_v50 }
 0x2d5   :  { %v759_v52 = vpop.eup %758 }
 0x2d6   :  { %347 = vrot.lane.b32.xlu0 %v759_v52, %s787_s2  ;;  %s760_s2 = scalar_lea.vmem %s593_s12, 128 }
 0x2d7   :  { %p761_p0 = scmp.ne.s32.totalorder %s593_s12, %s760_s2  ;;  %p766_p2 = scmp.lt.s32.totalorder %s760_s2, %s760_s2 }
 0x2d9   :  { %p767_p3 = por %p766_p2, %p765_p1 }
 0x2da   :  { %575 = vrot.lane.b32.xlu0 %v340_v47, %s788_s13 }
 0x2db   :  { %p768_p4 = pnand %p767_p3, %p761_p0 }
 0x348   :  { %v348_v56 = vpop.permute.xlu0 %347 }
 0x349   :  { %v350_v57 = vmul.f32 %v348_v56, %v269_v53 }
 0x34b   :  { %v351_v59 = vadd.f32 %v350_v57, %v340_v47 }
 0x34c   :  { %v576_v19 = vpop.permute.xlu0 %575 }
 0x34d   :  { %578 = vrot.lane.b32.xlu1 %v351_v59, %s789_s19  ;;  %671 = vmatmul.mubr.msk.f32.vlgmr.msra.gmra.mrb[4].mxu0 %vm352_vm5, %v351_v59 }
 0x34e   :  { %739 = vmatpush3.bf16.msra.mxu0 %v738_v58  ;;  %681 = vmatprep.mubr.msk.f32.mxu0 %vm786_vm3, %v784_v5 }
 0x34f   :  { %740 = vmatprep.subr.bf16.mxu0 %v785_v11 }
 0x352   :  { %742 = vmatpush3.bf16.msra.mxu0 %v741_v62 }
 0x353   :  { %743 = vmatprep.subr.bf16.mxu0 %v785_v11 }
 0x3bf   :  { %v579_v20 = vpop.permute.xlu1 %578 }
 0x420   :  { %v422_v2 = vpop.f32.mrb[4].mxu0 }
 0x421   :  { %v423_v3 = vadd.f32 %v422_v2, %v78_v63  ;;  %v672_v4 = vpop.f32.mrb[5].mxu0 }
 0x423   :  { %v426_v7 = vmax.f32 %v423_v3, 0.0 }
 0x425   :  { %682 = vmatmul.mubr.msk.f32.vlgmr.msra.gmra.mrb[6].mxu0 %vm244_vm4, %v426_v7 }
 0x426   :  { %745 = vmatpush3.bf16.msra.mxu0 %v744_v6  ;;  %692 = vmatprep.mubr.msk.f32.mxu0 %vm786_vm3, %v784_v5 }
 0x427   :  { %746 = vmatprep.subr.bf16.mxu0 %v785_v11  ;;  %v80_v11 = vld [vmem:[%s1044_s5 + $0x7] ss:$0 sm:$0xff] }
 0x42a   :  { %748 = vmatpush3.bf16.msra.mxu0 %v747_v10 }
 0x4f8   :  { %v496_v13 = vpop.f32.mrb[6].mxu0 }
 0x4f9   :  { %v497_v14 = vadd.f32 %v496_v13, %v79_v12  ;;  %v683_v15 = vpop.f32.mrb[7].mxu0 }
 0x4fb   :  { %v500_v5 = vmax.f32 %v497_v14, 0.0 }
 0x4fd   :  { %693 = vmatmul.mubr.msk.f32.vlgmr.msra.gmra.mrb[8].mxu0 %vm244_vm4, %v500_v5 }
 0x5d0   :  { %v570_v16 = vpop.f32.mrb[8].mxu0 }
 0x5d1   :  { %v571_v17 = vadd.f32 %v570_v16, %v80_v11  ;;  %v694_v18 = vpop.f32.mrb[9].mxu0 }
 0x5d3   :  { %v581_v21 = vsel %vm93_vm0, %v571_v17, %v576_v19 }
 0x5d4   :  { %v582_v22 = vsel %vm244_vm4, %v581_v21, %v579_v20 }
 0x5d5   :  { %v584_v23 = vsel %vm583_vm6, %v582_v22, 0.0 }
 0x5d6   :  { %585 = vst [vmem:[#allocation2] sm:$0xff] %v584_v23 }
 0x5d7   :  { %771 = shalt.err (!%p768_p4)
}
 0x5d8   :  { %s772_s14 = scalar_lea.hbm %s1045_s6, 128 }
 0x5d9   :  { %p773_p5 = scmp.ne.s32.totalorder %s1045_s6, %s772_s14  ;;  %p776_p6 = scmp.lt.u32.totalorder %s772_s14, %s1045_s6 }
 0x5db   :  { %p778_p7 = pnand %p776_p6, %p773_p5 }
 0x5dd   :  { %781 = shalt.err (!%p778_p7)
}
 0x5de   :  { %595 = dma.vmem_to_hbm [thread:$0]  %s593_s12, 128, %s1045_s6, [#allocation3]  }
 0x5df   :  { %782 = dma.done.wait [#allocation3], 128  }
 0x5e0   :  { %783 = vsyncadd [#allocation3], 4294967168 }
 0x5e1   :  { %599 = vsyncpa [#allocation3], 1 }

</bundles_post_ra>
